<compile_context>
chip_gen: v7x
topology: tpu7x:2x2x1
jax: 0.10.0
libtpu: 0.0.40
codegen_flags: <defaults>
</compile_context>

<pallas_src>
import jax
import jax.numpy as jnp
from jax.experimental import pallas as pl
from jax.experimental.pallas import tpu as pltpu


def _compute_dtype(x_dtype):
    """bf16 math on bf16-native VPUs (v6e/v7x); f32 everywhere else."""
    if x_dtype != jnp.bfloat16:
        return jnp.float32
    try:
        kind = jax.devices()[0].device_kind.lower()
    except Exception:
        kind = ""
    # v5e and older have no bf16 VPU -> keep the f32 upcast there.
    if any(tag in kind for tag in ("v2", "v3", "v4", "v5")):
        return jnp.float32
    return jnp.bfloat16


def _make_outconv_kernel(bn, c_in, c_out, cdt):
    def kernel(x_ref, w_ref, b_ref, o_ref):
        # x_ref: (bn, C_in, TM) VMEM   w_ref: (C_out, C_in) SMEM
        # b_ref: (C_out,)       SMEM   o_ref: (bn, C_out, TM) VMEM
        # Small static channel counts -> fully unrolled VPU FMAs.
        # Per-row Ref slices/stores: no (C_in,TM) materialization, no concat,
        # no extra cast copy of the full output tile.
        for b in range(bn):
            for o in range(c_out):
                acc = x_ref[b, 0:1, :].astype(cdt) * w_ref[o, 0].astype(cdt)
                for c in range(1, c_in):
                    acc = acc + x_ref[b, c:c + 1, :].astype(cdt) * w_ref[o, c].astype(cdt)
                o_ref[b, o:o + 1, :] = (acc + b_ref[o].astype(cdt)).astype(o_ref.dtype)

    return kernel


def outconv_1x1(x_nchw, weight, bias, *, max_tm=32768, target_step_bytes=2 << 20):
    """1x1 Conv2d forward (== nn.Conv2d(in_channels, out_channels, kernel_size=1)).

    x_nchw: (N, C_in, H, W)
    weight: (C_out, C_in, 1, 1)   (PyTorch Conv2d layout)
    bias:   (C_out,)
    returns (N, C_out, H, W)
    """
    N, C_in, H, W = x_nchw.shape
    C_out = weight.shape[0]
    HW = H * W
    itemsize = jnp.dtype(x_nchw.dtype).itemsize
    bytes_per_pix = (C_in + C_out) * itemsize

    # --- pixel (lane) tile: as large as possible; multiple of 128 or full HW.
    if HW <= max_tm:
        tm = HW                       # full extent (always legal)
    else:
        tm = max_tm                   # multiple of 128; ragged tail masked
    grid_j = pl.cdiv(HW, tm)

    # --- fold batch into the block for small images so each grid step moves
    #     ~target_step_bytes of HBM traffic (amortizes ~0.35us/step overhead).
    bn = max(1, min(N, target_step_bytes // max(1, bytes_per_pix * tm)))
    while N % bn:                     # keep the batch grid exact
        bn -= 1
    grid_n = N // bn

    # --- keep >=2 grid steps when possible so both v7x TensorCores get work
    #     (dimension_semantics is "parallel"); neutral on single-TC v5e/v6e.
    if grid_n * grid_j == 1:
        if HW >= 256:
            tm = max(128, ((HW // 2) // 128) * 128)
            grid_j = pl.cdiv(HW, tm)
        elif N >= 2:
            bn = max(1, bn // 2)
            while N % bn:
                bn -= 1
            grid_n = N // bn

    x3 = x_nchw.reshape(N, C_in, HW)                  # free reshape of NCHW
    w_mat = weight.reshape(C_out, C_in).astype(jnp.float32)   # SMEM scalars
    b_vec = bias.reshape(C_out).astype(jnp.float32)            # SMEM scalars

    cdt = _compute_dtype(x_nchw.dtype)
    kernel = _make_outconv_kernel(bn, C_in, C_out, cdt)

    # Right-sized VMEM cap: default double-buffered in+out tiles plus slack.
    step_bytes = bn * (C_in + C_out) * itemsize * tm
    vmem_limit = int(min(max(2 * step_bytes + (2 << 20), 8 << 20), 48 << 20))

    cost = pl.CostEstimate(
        flops=2 * N * HW * C_in * C_out,
        transcendentals=0,
        bytes_accessed=N * HW * (C_in + C_out) * itemsize + C_out * (C_in + 1) * 4,
    )

    out3 = pl.pallas_call(
        kernel,
        out_shape=jax.ShapeDtypeStruct((N, C_out, HW), x_nchw.dtype),
        grid_spec=pltpu.PrefetchScalarGridSpec(
            num_scalar_prefetch=0,
            grid=(grid_n, grid_j),
            in_specs=[
                pl.BlockSpec((bn, C_in, tm), lambda n, j: (n, 0, j)),
                pl.BlockSpec(memory_space=pltpu.MemorySpace.SMEM),
                pl.BlockSpec(memory_space=pltpu.MemorySpace.SMEM),
            ],
            out_specs=pl.BlockSpec((bn, C_out, tm), lambda n, j: (n, 0, j)),
        ),
        compiler_params=pltpu.CompilerParams(
            dimension_semantics=("parallel", "parallel"),
            vmem_limit_bytes=vmem_limit,
        ),
        cost_estimate=cost,
    )(x3, w_mat, b_vec)

    return out3.reshape(N, C_out, H, W)               # free reshape back


if __name__ == "__main__":
    key = jax.random.PRNGKey(0)
    k_x, k_w, k_b = jax.random.split(key, 3)

    N, C_in, C_out, H, W = 2, 4, 3, 16, 16

    x = jax.random.normal(k_x, (N, C_in, H, W), dtype=jnp.float32)
    # Deterministic init mimicking nn.Conv2d default (uniform +-1/sqrt(fan_in)).
    fan_in = C_in * 1 * 1
    bound = 1.0 / (fan_in ** 0.5)
    weight = jax.random.uniform(k_w, (C_out, C_in, 1, 1),
                                minval=-bound, maxval=bound, dtype=jnp.float32)
    bias = jax.random.uniform(k_b, (C_out,),
                              minval=-bound, maxval=bound, dtype=jnp.float32)

    out = outconv_1x1(x, weight, bias)
    out = jax.block_until_ready(out)

    # Reference check (pure JAX einsum, same semantics as Conv2d k=1).
    ref = jnp.einsum("nchw,oc->nohw", x, weight.reshape(C_out, C_in)) \
        + bias[None, :, None, None]
    assert out.shape == (N, C_out, H, W)
    assert jnp.allclose(out, ref, atol=1e-5, rtol=1e-5)

    print("KERNEL_OK")
</pallas_src>

<mosaic_0001>
module attributes {stable_mosaic.version = 11 : i64} {
  func.func @kernel(%arg0: i32, %arg1: i32, %arg2: memref<2x4x128xf32, #tpu.memory_space<vmem>>, %arg3: memref<3x4xf32, #tpu.memory_space<smem>>, %arg4: memref<3xf32, #tpu.memory_space<smem>>, %arg5: memref<2x3x128xf32, #tpu.memory_space<vmem>>) attributes {dimension_semantics = [#tpu.dimension_semantics<parallel>, #tpu.dimension_semantics<parallel>], iteration_bounds = array<i64: 1, 2>, scalar_prefetch = 0 : i64, scratch_operands = 0 : i64, tpu.core_type = #tpu.core_type<tc>, window_params = [{transform_indices = @transform_0, window_bounds = array<i64: 2, 4, 128>}, {transform_indices = @transform_1, window_bounds = array<i64: 3, 4>}, {transform_indices = @transform_2, window_bounds = array<i64: 3>}, {transform_indices = @transform_3, window_bounds = array<i64: 2, 3, 128>}]} {
    %c0 = arith.constant 0 : index
    %c0_0 = arith.constant 0 : index
    %c0_1 = arith.constant 0 : index
    %0 = vector.load %arg2[%c0, %c0_0, %c0_1] : memref<2x4x128xf32, #tpu.memory_space<vmem>>, vector<1x1x128xf32>
    %1 = vector.shape_cast %0 : vector<1x1x128xf32> to vector<1x128xf32>
    %c0_2 = arith.constant 0 : index
    %c0_3 = arith.constant 0 : index
    %2 = memref.load %arg3[%c0_2, %c0_3] : memref<3x4xf32, #tpu.memory_space<smem>>
    %3 = vector.broadcast %2 : f32 to vector<1x128xf32>
    %4 = arith.mulf %1, %3 : vector<1x128xf32>
    %c0_4 = arith.constant 0 : index
    %c1 = arith.constant 1 : index
    %c0_5 = arith.constant 0 : index
    %5 = vector.load %arg2[%c0_4, %c1, %c0_5] : memref<2x4x128xf32, #tpu.memory_space<vmem>>, vector<1x1x128xf32>
    %6 = vector.shape_cast %5 : vector<1x1x128xf32> to vector<1x128xf32>
    %c0_6 = arith.constant 0 : index
    %c1_7 = arith.constant 1 : index
    %7 = memref.load %arg3[%c0_6, %c1_7] : memref<3x4xf32, #tpu.memory_space<smem>>
    %8 = vector.broadcast %7 : f32 to vector<1x128xf32>
    %9 = arith.mulf %6, %8 : vector<1x128xf32>
    %10 = arith.addf %4, %9 : vector<1x128xf32>
    %c0_8 = arith.constant 0 : index
    %c2 = arith.constant 2 : index
    %c0_9 = arith.constant 0 : index
    %11 = vector.load %arg2[%c0_8, %c2, %c0_9] : memref<2x4x128xf32, #tpu.memory_space<vmem>>, vector<1x1x128xf32>
    %12 = vector.shape_cast %11 : vector<1x1x128xf32> to vector<1x128xf32>
    %c0_10 = arith.constant 0 : index
    %c2_11 = arith.constant 2 : index
    %13 = memref.load %arg3[%c0_10, %c2_11] : memref<3x4xf32, #tpu.memory_space<smem>>
    %14 = vector.broadcast %13 : f32 to vector<1x128xf32>
    %15 = arith.mulf %12, %14 : vector<1x128xf32>
    %16 = arith.addf %10, %15 : vector<1x128xf32>
    %c0_12 = arith.constant 0 : index
    %c3 = arith.constant 3 : index
    %c0_13 = arith.constant 0 : index
    %17 = vector.load %arg2[%c0_12, %c3, %c0_13] : memref<2x4x128xf32, #tpu.memory_space<vmem>>, vector<1x1x128xf32>
    %18 = vector.shape_cast %17 : vector<1x1x128xf32> to vector<1x128xf32>
    %c0_14 = arith.constant 0 : index
    %c3_15 = arith.constant 3 : index
    %19 = memref.load %arg3[%c0_14, %c3_15] : memref<3x4xf32, #tpu.memory_space<smem>>
    %20 = vector.broadcast %19 : f32 to vector<1x128xf32>
    %21 = arith.mulf %18, %20 : vector<1x128xf32>
    %22 = arith.addf %16, %21 : vector<1x128xf32>
    %c0_16 = arith.constant 0 : index
    %23 = memref.load %arg4[%c0_16] : memref<3xf32, #tpu.memory_space<smem>>
    %24 = vector.broadcast %23 : f32 to vector<1x128xf32>
    %25 = arith.addf %22, %24 : vector<1x128xf32>
    %c0_17 = arith.constant 0 : index
    %c0_18 = arith.constant 0 : index
    %c0_19 = arith.constant 0 : index
    %26 = vector.load %arg5[%c0_17, %c0_18, %c0_19] : memref<2x3x128xf32, #tpu.memory_space<vmem>>, vector<1x1x128xf32>
    %27 = vector.shape_cast %26 : vector<1x1x128xf32> to vector<1x128xf32>
    %28 = vector.shape_cast %25 : vector<1x128xf32> to vector<1x1x128xf32>
    tpu.vector_store %arg5[%c0_17, %c0_18, %c0_19], %28 {strides = array<i32>} : memref<2x3x128xf32, #tpu.memory_space<vmem>>, vector<1x1x128xf32>,
    %c0_20 = arith.constant 0 : index
    %c0_21 = arith.constant 0 : index
    %c0_22 = arith.constant 0 : index
    %29 = vector.load %arg2[%c0_20, %c0_21, %c0_22] : memref<2x4x128xf32, #tpu.memory_space<vmem>>, vector<1x1x128xf32>
    %30 = vector.shape_cast %29 : vector<1x1x128xf32> to vector<1x128xf32>
    %c1_23 = arith.constant 1 : index
    %c0_24 = arith.constant 0 : index
    %31 = memref.load %arg3[%c1_23, %c0_24] : memref<3x4xf32, #tpu.memory_space<smem>>
    %32 = vector.broadcast %31 : f32 to vector<1x128xf32>
    %33 = arith.mulf %30, %32 : vector<1x128xf32>
    %c0_25 = arith.constant 0 : index
    %c1_26 = arith.constant 1 : index
    %c0_27 = arith.constant 0 : index
    %34 = vector.load %arg2[%c0_25, %c1_26, %c0_27] : memref<2x4x128xf32, #tpu.memory_space<vmem>>, vector<1x1x128xf32>
    %35 = vector.shape_cast %34 : vector<1x1x128xf32> to vector<1x128xf32>
    %c1_28 = arith.constant 1 : index
    %c1_29 = arith.constant 1 : index
    %36 = memref.load %arg3[%c1_28, %c1_29] : memref<3x4xf32, #tpu.memory_space<smem>>
    %37 = vector.broadcast %36 : f32 to vector<1x128xf32>
    %38 = arith.mulf %35, %37 : vector<1x128xf32>
    %39 = arith.addf %33, %38 : vector<1x128xf32>
    %c0_30 = arith.constant 0 : index
    %c2_31 = arith.constant 2 : index
    %c0_32 = arith.constant 0 : index
    %40 = vector.load %arg2[%c0_30, %c2_31, %c0_32] : memref<2x4x128xf32, #tpu.memory_space<vmem>>, vector<1x1x128xf32>
    %41 = vector.shape_cast %40 : vector<1x1x128xf32> to vector<1x128xf32>
    %c1_33 = arith.constant 1 : index
    %c2_34 = arith.constant 2 : index
    %42 = memref.load %arg3[%c1_33, %c2_34] : memref<3x4xf32, #tpu.memory_space<smem>>
    %43 = vector.broadcast %42 : f32 to vector<1x128xf32>
    %44 = arith.mulf %41, %43 : vector<1x128xf32>
    %45 = arith.addf %39, %44 : vector<1x128xf32>
    %c0_35 = arith.constant 0 : index
    %c3_36 = arith.constant 3 : index
    %c0_37 = arith.constant 0 : index
    %46 = vector.load %arg2[%c0_35, %c3_36, %c0_37] : memref<2x4x128xf32, #tpu.memory_space<vmem>>, vector<1x1x128xf32>
    %47 = vector.shape_cast %46 : vector<1x1x128xf32> to vector<1x128xf32>
    %c1_38 = arith.constant 1 : index
    %c3_39 = arith.constant 3 : index
    %48 = memref.load %arg3[%c1_38, %c3_39] : memref<3x4xf32, #tpu.memory_space<smem>>
    %49 = vector.broadcast %48 : f32 to vector<1x128xf32>
    %50 = arith.mulf %47, %49 : vector<1x128xf32>
    %51 = arith.addf %45, %50 : vector<1x128xf32>
    %c1_40 = arith.constant 1 : index
    %52 = memref.load %arg4[%c1_40] : memref<3xf32, #tpu.memory_space<smem>>
    %53 = vector.broadcast %52 : f32 to vector<1x128xf32>
    %54 = arith.addf %51, %53 : vector<1x128xf32>
    %c0_41 = arith.constant 0 : index
    %c1_42 = arith.constant 1 : index
    %c0_43 = arith.constant 0 : index
    %55 = vector.load %arg5[%c0_41, %c1_42, %c0_43] : memref<2x3x128xf32, #tpu.memory_space<vmem>>, vector<1x1x128xf32>
    %56 = vector.shape_cast %55 : vector<1x1x128xf32> to vector<1x128xf32>
    %57 = vector.shape_cast %54 : vector<1x128xf32> to vector<1x1x128xf32>
    tpu.vector_store %arg5[%c0_41, %c1_42, %c0_43], %57 {strides = array<i32>} : memref<2x3x128xf32, #tpu.memory_space<vmem>>, vector<1x1x128xf32>,
    %c0_44 = arith.constant 0 : index
    %c0_45 = arith.constant 0 : index
    %c0_46 = arith.constant 0 : index
    %58 = vector.load %arg2[%c0_44, %c0_45, %c0_46] : memref<2x4x128xf32, #tpu.memory_space<vmem>>, vector<1x1x128xf32>
    %59 = vector.shape_cast %58 : vector<1x1x128xf32> to vector<1x128xf32>
    %c2_47 = arith.constant 2 : index
    %c0_48 = arith.constant 0 : index
    %60 = memref.load %arg3[%c2_47, %c0_48] : memref<3x4xf32, #tpu.memory_space<smem>>
    %61 = vector.broadcast %60 : f32 to vector<1x128xf32>
    %62 = arith.mulf %59, %61 : vector<1x128xf32>
    %c0_49 = arith.constant 0 : index
    %c1_50 = arith.constant 1 : index
    %c0_51 = arith.constant 0 : index
    %63 = vector.load %arg2[%c0_49, %c1_50, %c0_51] : memref<2x4x128xf32, #tpu.memory_space<vmem>>, vector<1x1x128xf32>
    %64 = vector.shape_cast %63 : vector<1x1x128xf32> to vector<1x128xf32>
    %c2_52 = arith.constant 2 : index
    %c1_53 = arith.constant 1 : index
    %65 = memref.load %arg3[%c2_52, %c1_53] : memref<3x4xf32, #tpu.memory_space<smem>>
    %66 = vector.broadcast %65 : f32 to vector<1x128xf32>
    %67 = arith.mulf %64, %66 : vector<1x128xf32>
    %68 = arith.addf %62, %67 : vector<1x128xf32>
    %c0_54 = arith.constant 0 : index
    %c2_55 = arith.constant 2 : index
    %c0_56 = arith.constant 0 : index
    %69 = vector.load %arg2[%c0_54, %c2_55, %c0_56] : memref<2x4x128xf32, #tpu.memory_space<vmem>>, vector<1x1x128xf32>
    %70 = vector.shape_cast %69 : vector<1x1x128xf32> to vector<1x128xf32>
    %c2_57 = arith.constant 2 : index
    %c2_58 = arith.constant 2 : index
    %71 = memref.load %arg3[%c2_57, %c2_58] : memref<3x4xf32, #tpu.memory_space<smem>>
    %72 = vector.broadcast %71 : f32 to vector<1x128xf32>
    %73 = arith.mulf %70, %72 : vector<1x128xf32>
    %74 = arith.addf %68, %73 : vector<1x128xf32>
    %c0_59 = arith.constant 0 : index
    %c3_60 = arith.constant 3 : index
    %c0_61 = arith.constant 0 : index
    %75 = vector.load %arg2[%c0_59, %c3_60, %c0_61] : memref<2x4x128xf32, #tpu.memory_space<vmem>>, vector<1x1x128xf32>
    %76 = vector.shape_cast %75 : vector<1x1x128xf32> to vector<1x128xf32>
    %c2_62 = arith.constant 2 : index
    %c3_63 = arith.constant 3 : index
    %77 = memref.load %arg3[%c2_62, %c3_63] : memref<3x4xf32, #tpu.memory_space<smem>>
    %78 = vector.broadcast %77 : f32 to vector<1x128xf32>
    %79 = arith.mulf %76, %78 : vector<1x128xf32>
    %80 = arith.addf %74, %79 : vector<1x128xf32>
    %c2_64 = arith.constant 2 : index
    %81 = memref.load %arg4[%c2_64] : memref<3xf32, #tpu.memory_space<smem>>
    %82 = vector.broadcast %81 : f32 to vector<1x128xf32>
    %83 = arith.addf %80, %82 : vector<1x128xf32>
    %c0_65 = arith.constant 0 : index
    %c2_66 = arith.constant 2 : index
    %c0_67 = arith.constant 0 : index
    %84 = vector.load %arg5[%c0_65, %c2_66, %c0_67] : memref<2x3x128xf32, #tpu.memory_space<vmem>>, vector<1x1x128xf32>
    %85 = vector.shape_cast %84 : vector<1x1x128xf32> to vector<1x128xf32>
    %86 = vector.shape_cast %83 : vector<1x128xf32> to vector<1x1x128xf32>
    tpu.vector_store %arg5[%c0_65, %c2_66, %c0_67], %86 {strides = array<i32>} : memref<2x3x128xf32, #tpu.memory_space<vmem>>, vector<1x1x128xf32>,
    %c1_68 = arith.constant 1 : index
    %c0_69 = arith.constant 0 : index
    %c0_70 = arith.constant 0 : index
    %87 = vector.load %arg2[%c1_68, %c0_69, %c0_70] : memref<2x4x128xf32, #tpu.memory_space<vmem>>, vector<1x1x128xf32>
    %88 = vector.shape_cast %87 : vector<1x1x128xf32> to vector<1x128xf32>
    %c0_71 = arith.constant 0 : index
    %c0_72 = arith.constant 0 : index
    %89 = memref.load %arg3[%c0_71, %c0_72] : memref<3x4xf32, #tpu.memory_space<smem>>
    %90 = vector.broadcast %89 : f32 to vector<1x128xf32>
    %91 = arith.mulf %88, %90 : vector<1x128xf32>
    %c1_73 = arith.constant 1 : index
    %c1_74 = arith.constant 1 : index
    %c0_75 = arith.constant 0 : index
    %92 = vector.load %arg2[%c1_73, %c1_74, %c0_75] : memref<2x4x128xf32, #tpu.memory_space<vmem>>, vector<1x1x128xf32>
    %93 = vector.shape_cast %92 : vector<1x1x128xf32> to vector<1x128xf32>
    %c0_76 = arith.constant 0 : index
    %c1_77 = arith.constant 1 : index
    %94 = memref.load %arg3[%c0_76, %c1_77] : memref<3x4xf32, #tpu.memory_space<smem>>
    %95 = vector.broadcast %94 : f32 to vector<1x128xf32>
    %96 = arith.mulf %93, %95 : vector<1x128xf32>
    %97 = arith.addf %91, %96 : vector<1x128xf32>
    %c1_78 = arith.constant 1 : index
    %c2_79 = arith.constant 2 : index
    %c0_80 = arith.constant 0 : index
    %98 = vector.load %arg2[%c1_78, %c2_79, %c0_80] : memref<2x4x128xf32, #tpu.memory_space<vmem>>, vector<1x1x128xf32>
    %99 = vector.shape_cast %98 : vector<1x1x128xf32> to vector<1x128xf32>
    %c0_81 = arith.constant 0 : index
    %c2_82 = arith.constant 2 : index
    %100 = memref.load %arg3[%c0_81, %c2_82] : memref<3x4xf32, #tpu.memory_space<smem>>
    %101 = vector.broadcast %100 : f32 to vector<1x128xf32>
    %102 = arith.mulf %99, %101 : vector<1x128xf32>
    %103 = arith.addf %97, %102 : vector<1x128xf32>
    %c1_83 = arith.constant 1 : index
    %c3_84 = arith.constant 3 : index
    %c0_85 = arith.constant 0 : index
    %104 = vector.load %arg2[%c1_83, %c3_84, %c0_85] : memref<2x4x128xf32, #tpu.memory_space<vmem>>, vector<1x1x128xf32>
    %105 = vector.shape_cast %104 : vector<1x1x128xf32> to vector<1x128xf32>
    %c0_86 = arith.constant 0 : index
    %c3_87 = arith.constant 3 : index
    %106 = memref.load %arg3[%c0_86, %c3_87] : memref<3x4xf32, #tpu.memory_space<smem>>
    %107 = vector.broadcast %106 : f32 to vector<1x128xf32>
    %108 = arith.mulf %105, %107 : vector<1x128xf32>
    %109 = arith.addf %103, %108 : vector<1x128xf32>
    %c0_88 = arith.constant 0 : index
    %110 = memref.load %arg4[%c0_88] : memref<3xf32, #tpu.memory_space<smem>>
    %111 = vector.broadcast %110 : f32 to vector<1x128xf32>
    %112 = arith.addf %109, %111 : vector<1x128xf32>
    %c1_89 = arith.constant 1 : index
    %c0_90 = arith.constant 0 : index
    %c0_91 = arith.constant 0 : index
    %113 = vector.load %arg5[%c1_89, %c0_90, %c0_91] : memref<2x3x128xf32, #tpu.memory_space<vmem>>, vector<1x1x128xf32>
    %114 = vector.shape_cast %113 : vector<1x1x128xf32> to vector<1x128xf32>
    %115 = vector.shape_cast %112 : vector<1x128xf32> to vector<1x1x128xf32>
    tpu.vector_store %arg5[%c1_89, %c0_90, %c0_91], %115 {strides = array<i32>} : memref<2x3x128xf32, #tpu.memory_space<vmem>>, vector<1x1x128xf32>,
    %c1_92 = arith.constant 1 : index
    %c0_93 = arith.constant 0 : index
    %c0_94 = arith.constant 0 : index
    %116 = vector.load %arg2[%c1_92, %c0_93, %c0_94] : memref<2x4x128xf32, #tpu.memory_space<vmem>>, vector<1x1x128xf32>
    %117 = vector.shape_cast %116 : vector<1x1x128xf32> to vector<1x128xf32>
    %c1_95 = arith.constant 1 : index
    %c0_96 = arith.constant 0 : index
    %118 = memref.load %arg3[%c1_95, %c0_96] : memref<3x4xf32, #tpu.memory_space<smem>>
    %119 = vector.broadcast %118 : f32 to vector<1x128xf32>
    %120 = arith.mulf %117, %119 : vector<1x128xf32>
    %c1_97 = arith.constant 1 : index
    %c1_98 = arith.constant 1 : index
    %c0_99 = arith.constant 0 : index
    %121 = vector.load %arg2[%c1_97, %c1_98, %c0_99] : memref<2x4x128xf32, #tpu.memory_space<vmem>>, vector<1x1x128xf32>
    %122 = vector.shape_cast %121 : vector<1x1x128xf32> to vector<1x128xf32>
    %c1_100 = arith.constant 1 : index
    %c1_101 = arith.constant 1 : index
    %123 = memref.load %arg3[%c1_100, %c1_101] : memref<3x4xf32, #tpu.memory_space<smem>>
    %124 = vector.broadcast %123 : f32 to vector<1x128xf32>
    %125 = arith.mulf %122, %124 : vector<1x128xf32>
    %126 = arith.addf %120, %125 : vector<1x128xf32>
    %c1_102 = arith.constant 1 : index
    %c2_103 = arith.constant 2 : index
    %c0_104 = arith.constant 0 : index
    %127 = vector.load %arg2[%c1_102, %c2_103, %c0_104] : memref<2x4x128xf32, #tpu.memory_space<vmem>>, vector<1x1x128xf32>
    %128 = vector.shape_cast %127 : vector<1x1x128xf32> to vector<1x128xf32>
    %c1_105 = arith.constant 1 : index
    %c2_106 = arith.constant 2 : index
    %129 = memref.load %arg3[%c1_105, %c2_106] : memref<3x4xf32, #tpu.memory_space<smem>>
    %130 = vector.broadcast %129 : f32 to vector<1x128xf32>
    %131 = arith.mulf %128, %130 : vector<1x128xf32>
    %132 = arith.addf %126, %131 : vector<1x128xf32>
    %c1_107 = arith.constant 1 : index
    %c3_108 = arith.constant 3 : index
    %c0_109 = arith.constant 0 : index
    %133 = vector.load %arg2[%c1_107, %c3_108, %c0_109] : memref<2x4x128xf32, #tpu.memory_space<vmem>>, vector<1x1x128xf32>
    %134 = vector.shape_cast %133 : vector<1x1x128xf32> to vector<1x128xf32>
    %c1_110 = arith.constant 1 : index
    %c3_111 = arith.constant 3 : index
    %135 = memref.load %arg3[%c1_110, %c3_111] : memref<3x4xf32, #tpu.memory_space<smem>>
    %136 = vector.broadcast %135 : f32 to vector<1x128xf32>
    %137 = arith.mulf %134, %136 : vector<1x128xf32>
    %138 = arith.addf %132, %137 : vector<1x128xf32>
    %c1_112 = arith.constant 1 : index
    %139 = memref.load %arg4[%c1_112] : memref<3xf32, #tpu.memory_space<smem>>
    %140 = vector.broadcast %139 : f32 to vector<1x128xf32>
    %141 = arith.addf %138, %140 : vector<1x128xf32>
    %c1_113 = arith.constant 1 : index
    %c1_114 = arith.constant 1 : index
    %c0_115 = arith.constant 0 : index
    %142 = vector.load %arg5[%c1_113, %c1_114, %c0_115] : memref<2x3x128xf32, #tpu.memory_space<vmem>>, vector<1x1x128xf32>
    %143 = vector.shape_cast %142 : vector<1x1x128xf32> to vector<1x128xf32>
    %144 = vector.shape_cast %141 : vector<1x128xf32> to vector<1x1x128xf32>
    tpu.vector_store %arg5[%c1_113, %c1_114, %c0_115], %144 {strides = array<i32>} : memref<2x3x128xf32, #tpu.memory_space<vmem>>, vector<1x1x128xf32>,
    %c1_116 = arith.constant 1 : index
    %c0_117 = arith.constant 0 : index
    %c0_118 = arith.constant 0 : index
    %145 = vector.load %arg2[%c1_116, %c0_117, %c0_118] : memref<2x4x128xf32, #tpu.memory_space<vmem>>, vector<1x1x128xf32>
    %146 = vector.shape_cast %145 : vector<1x1x128xf32> to vector<1x128xf32>
    %c2_119 = arith.constant 2 : index
    %c0_120 = arith.constant 0 : index
    %147 = memref.load %arg3[%c2_119, %c0_120] : memref<3x4xf32, #tpu.memory_space<smem>>
    %148 = vector.broadcast %147 : f32 to vector<1x128xf32>
    %149 = arith.mulf %146, %148 : vector<1x128xf32>
    %c1_121 = arith.constant 1 : index
    %c1_122 = arith.constant 1 : index
    %c0_123 = arith.constant 0 : index
    %150 = vector.load %arg2[%c1_121, %c1_122, %c0_123] : memref<2x4x128xf32, #tpu.memory_space<vmem>>, vector<1x1x128xf32>
    %151 = vector.shape_cast %150 : vector<1x1x128xf32> to vector<1x128xf32>
    %c2_124 = arith.constant 2 : index
    %c1_125 = arith.constant 1 : index
    %152 = memref.load %arg3[%c2_124, %c1_125] : memref<3x4xf32, #tpu.memory_space<smem>>
    %153 = vector.broadcast %152 : f32 to vector<1x128xf32>
    %154 = arith.mulf %151, %153 : vector<1x128xf32>
    %155 = arith.addf %149, %154 : vector<1x128xf32>
    %c1_126 = arith.constant 1 : index
    %c2_127 = arith.constant 2 : index
    %c0_128 = arith.constant 0 : index
    %156 = vector.load %arg2[%c1_126, %c2_127, %c0_128] : memref<2x4x128xf32, #tpu.memory_space<vmem>>, vector<1x1x128xf32>
    %157 = vector.shape_cast %156 : vector<1x1x128xf32> to vector<1x128xf32>
    %c2_129 = arith.constant 2 : index
    %c2_130 = arith.constant 2 : index
    %158 = memref.load %arg3[%c2_129, %c2_130] : memref<3x4xf32, #tpu.memory_space<smem>>
    %159 = vector.broadcast %158 : f32 to vector<1x128xf32>
    %160 = arith.mulf %157, %159 : vector<1x128xf32>
    %161 = arith.addf %155, %160 : vector<1x128xf32>
    %c1_131 = arith.constant 1 : index
    %c3_132 = arith.constant 3 : index
    %c0_133 = arith.constant 0 : index
    %162 = vector.load %arg2[%c1_131, %c3_132, %c0_133] : memref<2x4x128xf32, #tpu.memory_space<vmem>>, vector<1x1x128xf32>
    %163 = vector.shape_cast %162 : vector<1x1x128xf32> to vector<1x128xf32>
    %c2_134 = arith.constant 2 : index
    %c3_135 = arith.constant 3 : index
    %164 = memref.load %arg3[%c2_134, %c3_135] : memref<3x4xf32, #tpu.memory_space<smem>>
    %165 = vector.broadcast %164 : f32 to vector<1x128xf32>
    %166 = arith.mulf %163, %165 : vector<1x128xf32>
    %167 = arith.addf %161, %166 : vector<1x128xf32>
    %c2_136 = arith.constant 2 : index
    %168 = memref.load %arg4[%c2_136] : memref<3xf32, #tpu.memory_space<smem>>
    %169 = vector.broadcast %168 : f32 to vector<1x128xf32>
    %170 = arith.addf %167, %169 : vector<1x128xf32>
    %c1_137 = arith.constant 1 : index
    %c2_138 = arith.constant 2 : index
    %c0_139 = arith.constant 0 : index
    %171 = vector.load %arg5[%c1_137, %c2_138, %c0_139] : memref<2x3x128xf32, #tpu.memory_space<vmem>>, vector<1x1x128xf32>
    %172 = vector.shape_cast %171 : vector<1x1x128xf32> to vector<1x128xf32>
    %173 = vector.shape_cast %170 : vector<1x128xf32> to vector<1x1x128xf32>
    tpu.vector_store %arg5[%c1_137, %c2_138, %c0_139], %173 {strides = array<i32>} : memref<2x3x128xf32, #tpu.memory_space<vmem>>, vector<1x1x128xf32>,
    return
  }
  func.func @transform_0(%arg0: i32, %arg1: i32) -> (i32, i32, i32) {
    %c0_i32 = arith.constant 0 : i32
    %c0_i32_0 = arith.constant 0 : i32
    return %arg0, %c0_i32, %arg1 : i32, i32, i32
  }
  func.func @transform_1(%arg0: i32, %arg1: i32) -> (i32, i32) {
    %c0_i32 = arith.constant 0 : i32
    %c0_i32_0 = arith.constant 0 : i32
    %c0_i32_1 = arith.constant 0 : i32
    return %c0_i32, %c0_i32_0 : i32, i32
  }
  func.func @transform_2(%arg0: i32, %arg1: i32) -> i32 {
    %c0_i32 = arith.constant 0 : i32
    %c0_i32_0 = arith.constant 0 : i32
    return %c0_i32 : i32
  }
  func.func @transform_3(%arg0: i32, %arg1: i32) -> (i32, i32, i32) {
    %c0_i32 = arith.constant 0 : i32
    %c0_i32_0 = arith.constant 0 : i32
    return %arg0, %c0_i32, %arg1 : i32, i32, i32
  }
}

</mosaic_0001>

<bundles_post_ra>
// kernel: tpu_custom_call.1
= control target key start
LH: loop header
LB: loop body
LE: loop exit
PB: predicated region body
PF: predicated region fallthrough
CT: control target
= control target key end

     0   :  { %8 = vsyncpa [#allocation3], 0  ;;  %s1067_s0 = inlined_call_operand.hbm [shape: f32[2,4,256], index: 0, kind: input, shape index: {}]   ;;  %s1068_s1 = inlined_call_operand.hbm [shape: f32[3,4], index: 1, kind: input, shape index: {}]   ;;  %s1069_s2 = inlined_call_operand.vmem [shape: f32[3], index: 2, kind: input, shape index: {}]   ;;  %s1070_s3 = inlined_call_operand.vmem [shape: f32[2,3,256], index: 3, kind: output, shape index: {}]  }
   0x1   :  { %10 = vsyncpa [#allocation3 + $0x1], 0 }
   0x2   :  { %11 = vsyncpa [#allocation4], 0 }
   0x3   :  { %12 = vsyncpa [#allocation5], 0  ;;  %s804_s12 = smov 0   ;;  %s806_s13 = smov 0  }
   0x4   :  { %s808_s14 = smov 0   ;;  %s810_s15 = smov 0  }
   0x5   :  { %s812_s16 = smov 0   ;;  %s814_s17 = smov 0  }
   0x6 LB: > { %s523_s18 = sadd.s32 4294967295, %s776_s17   ;;  %s39_s19 = sadd.s32 1, %s764_s14  ;;  %s776_s17 = sphi %s814_s17, %s18_s17   ;;  %s772_s16 = sphi %s812_s16, %s1087_s16   ;;  %s768_s15 = sphi %s810_s15, %s1086_s15   ;;  %s764_s14 = sphi %s808_s14, %s1085_s14   ;;  %s760_s13 = sphi %s806_s13, %s1084_s13   ;;  %s756_s12 = sphi %s804_s12, %s1083_s12  }
   0x7   : > { %p46_p0 = scmp.ne.s32.totalorder %s764_s14, %s760_s13  ;;  %p47_p1 = scmp.eq.s32.totalorder %s776_s17, 0 }
   0x8   : > { %p52_p2 = scmp.ne.s32.totalorder %s760_s13, %s756_s12  ;;  %p838_p3 = scmp.eq.s32.totalorder %s523_s18, 0 }
   0x9   : > { %p48_p4 = por %p47_p1, %p46_p0  ;;  %p120_p5 = scmp.eq.s32.totalorder %s523_s18, 1 }
   0xa   : > { %s1074_s20 = scalar_select %p838_p3, 1, 0 }
   0xb   : > { %p844_p6 = por %p838_p3, %p52_p2  ;;  %p525_p7 = scmp.ge.s32.totalorder %s776_s17, 1 }
   0xc   : > { %p849_p8 = por %p120_p5, %p46_p0  ;;  %p133_p9 = scmp.lt.s32.totalorder %s776_s17, 3 }
   0xd   : > { %s1075_s21 = scalar_select %p844_p6, 1, 0 }
   0xe   : > { %s1076_s22 = scalar_select %p849_p8, 1, 0 }
   0xf   : > { %p854_p10 = pnand %p525_p7, %p133_p9  ;;  %p604_p11 = scmp.lt.s32.totalorder %s776_s17, 2 }
  0x10   : > { %s155_s26 = sshll.u32 %s1069_s2, 4  ;;  %s27_s29 = sadd.s32 1, %s772_s16  ;;  %s156_s26 = int_to_ptr.vmem [resolvable:$true] %s155_s26 }
  0x11   : > { %p591_p12 = pneg %p854_p10  ;;  %p864_p13 = pnand %p604_p11, %p48_p4 }
  0x12   : > { %s660_s5 = scalar_lea.hbm %s1068_s1, 64 }
  0x13   : > { %p870_p0 = pnand %p591_p12, %p838_p3  ;;  %p661_p1 = scmp.ne.s32.totalorder %s1068_s1, %s660_s5 }
  0x14   : > { %p667_p7 = scmp.lt.u32.totalorder %s660_s5, %s1068_s1 }
  0x15   : > { %p662_p2 = pneg %p870_p0 }
  0x17   : > { %p663_p4 = pnand %p662_p2, %p661_p1 }
  0x19   : > { %p664_p5 = pneg %p663_p4 }
  0x1b   : > { %p669_p9 = pnand %p667_p7, %p664_p5 }
  0x1d   : > { %672 = shalt.err (!%p669_p9)
}
  0x1e   : > { %s778_s10 = smov [#allocation6]   ;;  %s673_s18 = scalar_lea.vmem %s156_s26, 16 }
  0x1f   : > { %594 = dma.hbm_to_smem (!%p870_p0), %s1068_s1, 64, %s778_s10, [#allocation4]  }
  0x20   : > { %p674_p11 = scmp.ne.s32.totalorder %s156_s26, %s673_s18  ;;  %p681_p3 = scmp.lt.s32.totalorder %s156_s26, %s156_s26 }
  0x21   : > { %p682_p1 = scmp.lt.s32.totalorder %s673_s18, %s673_s18 }
  0x22   : > { %p676_p12 = pnand %p674_p11, %p662_p2 }
  0x23   : > { %p683_p4 = por %p682_p1, %p681_p3 }
  0x24   : > { %p677_p8 = pneg %p676_p12 }
  0x26   : > { %p684_p6 = pnand %p683_p4, %p677_p8 }
  0x28   : > { %687 = shalt.err (!%p684_p6)
}
  0x29   : > { %s779_s24 = smov [#allocation7]   ;;  %p28_p5 = scmp.ge.s32.totalorder %s27_s29, 2 }
  0x2a   : > { %597 = dma.vmem_to_smem (!%p870_p0), %s156_s26, 16, %s779_s24, [#allocation5]  }
  0x2b   : > { %s166_s25 = sand.u32 1, %s764_s14   ;;  %s1089_s29 = smov (%p28_p5, %s27_s29), 0 }
  0x2c   : > { %s529_s30 = sshll.u32 %s166_s25, 3  ;;  %s530_s4 = sshll.u32 %s772_s16, 6 }
  0x2d   : > { %s35_s5 = ssub.s32 %s772_s16, %s1089_s29  ;;  %s902_s28 = scalar_lea.hbm %s1067_s0, %s530_s4 }
  0x2e   : > { %p37_p3 = scmp.eq.s32.totalorder %s35_s5, 0  ;;  %s170_s26 = scalar_lea.vmem [#allocation2], %s529_s30 }
  0x2f   : > { %s179_s8 = sshll.u32 %s170_s26, 4  ;;  %s911_s10 = scalar_lea.sflag [#allocation3], %s166_s25  ;;  %s904_s8 = int_to_ptr.vmem [resolvable:$true] %s179_s8 }
  0x30   : > { %s909_s9 = scalar_select %p37_p3, %s764_s14, %s39_s19  }
  0x31   : > { %s688_s11 = scalar_lea.hbm %s902_s28, 128  ;;  %p690_p8 = pneg %p864_p13 }
  0x32   : > { %p689_p6 = scmp.ne.s32.totalorder %s902_s28, %s688_s11  ;;  %s693_s24 = scalar_lea.hbm %s1067_s0, 256 }
  0x33   : > { %p694_p7 = scmp.lt.u32.totalorder %s902_s28, %s1067_s0  ;;  %p695_p9 = scmp.lt.u32.totalorder %s693_s24, %s688_s11 }
  0x34   : > { %p691_p0 = pnand %p690_p8, %p689_p6  ;;  %p697_p12 = scmp.lt.u32.totalorder %s688_s11, %s902_s28 }
  0x35   : > { %p696_p11 = por %p695_p9, %p694_p7 }
  0x36   : > { %p692_p2 = pneg %p691_p0 }
  0x37   : > { %p698_p1 = por %p697_p12, %p696_p11 }
  0x39   : > { %p699_p4 = pnand %p698_p1, %p692_p2 }
  0x3b   : > { %702 = shalt.err (!%p699_p4)
}
  0x3c   : > { %s703_s19 = scalar_lea.vmem %s904_s8, 128  ;;  %s780_s25 = smov [#allocation2]  }
  0x3d   : > { %p704_p5 = scmp.ne.s32.totalorder %s904_s8, %s703_s19  ;;  %s708_s5 = sshll.u32 %s780_s25, 4  ;;  %s709_s5 = int_to_ptr.vmem [resolvable:$false] %s708_s5 }
  0x3e   : > { %s710_s6 = scalar_lea.vmem %s709_s5, 256  ;;  %p711_p0 = scmp.lt.s32.totalorder %s904_s8, %s709_s5 }
  0x3f   : > { %p706_p3 = pnand %p704_p5, %p690_p8  ;;  %p712_p7 = scmp.lt.s32.totalorder %s710_s6, %s703_s19 }
  0x41   : > { %p707_p6 = pneg %p706_p3  ;;  %p713_p9 = por %p712_p7, %p711_p0 }
  0x43   : > { %p714_p11 = pnand %p713_p9, %p707_p6 }
  0x45   : > { %717 = shalt.err (!%p714_p11)
}
  0x46   : > { %s781_s7 = smov 128   ;;  %s782_s26 = smov 64  }
  0x47   : > { %s783_s11 = smov 4   ;;  %191 = sbr.rel (%p854_p10) target bundleno = 123 (0x7b), region = 32 }
  0x48   : > { %601 = dma.hbm_to_vmem [thread:$0]  (!%p864_p13), %s902_s28, 128, %s904_s8, %s911_s10, %s781_s7, %s782_s26, %s783_s11  }
  0x49   : > { %s193_s12 = sand.u32 (!%p854_p10), 1, %s760_s13   ;;  %p1080_p8 = scmp.ne.s32.totalorder (!%p854_p10), %s1075_s21, 0 }
  0x4a   : > { %s942_s18 = sshll.u32 (!%p854_p10), %s193_s12, 3  ;;  %s194_s24 = scalar_lea.sflag (!%p854_p10), [#allocation3], %s193_s12 }
  0x4b   : > { %s945_s30 = scalar_lea.vmem (!%p854_p10), [#allocation2], %s942_s18 }
  0x4e   : > { %743 = dma.done.wait (%p1080_p8), %s194_s24, 128  }
  0x4f   : > { %745 = vsyncadd (%p1080_p8), %s194_s24, 4294967168  ;;  %p1081_p2 = scmp.ne.s32.totalorder %s1074_s20, 0 }
  0x51   : > { %747 = dma.done.wait (%p1081_p2), [#allocation4], 64  }
  0x52   : > { %749 = vsyncadd (%p1081_p2), [#allocation4], 4294967232 }
  0x53   : > { %751 = dma.done.wait (%p1081_p2), [#allocation5], 16  }
  0x54   : > { %753 = vsyncadd (%p1081_p2), [#allocation5], 4294967280 }
  0x55   : > { %210 = sfence }
  0x56   : > { %s959_s23 = sld [smem:[#allocation6]]  ;;  %s961_s21 = sld [smem:[#allocation6 + $0x1]]  ;;  %v230_v0 = vld [vmem:[%s945_s30] sm:$0x1]  ;;  %v234_v1 = vld [vmem:[%s945_s30 + $0x1] sm:$0x1] }
  0x57   : > { %s963_s27 = sld [smem:[#allocation6 + $0x2]]  ;;  %s965_s28 = sld [smem:[#allocation6 + $0x3]]  ;;  %v239_v2 = vld [vmem:[%s945_s30 + $0x2] sm:$0x1]  ;;  %v244_v3 = vld [vmem:[%s945_s30 + $0x3] sm:$0x1] }
  0x58   : > { %s968_s20 = sld [smem:[#allocation7]]  ;;  %s974_s10 = sld [smem:[#allocation6 + $0x81]]  ;;  %v253_v5 = vld [vmem:[%s945_s30] sm:$0x1]  ;;  %v257_v8 = vld [vmem:[%s945_s30 + $0x1] sm:$0x1] }
  0x59   : > { %s970_s8 = sld [smem:[#allocation6 + $0x80]]  ;;  %s977_s4 = sld [smem:[#allocation6 + $0x82]]  ;;  %v262_v9 = vld [vmem:[%s945_s30 + $0x2] sm:$0x1]  ;;  %v267_v13 = vld [vmem:[%s945_s30 + $0x3] sm:$0x1] }
  0x5a   : > { %s979_s19 = sld [smem:[#allocation6 + $0x83]]  ;;  %s983_s25 = sld [smem:[#allocation7 + $0x1]]  ;;  %v549_v18 = vld [vmem:[%s945_s30 + $0x4] sm:$0x1]  ;;  %v550_v19 = vld [vmem:[%s945_s30 + $0x5] sm:$0x1] }
  0x5b   : > { %s985_s5 = sld [smem:[#allocation6 + $0x100]]  ;;  %s990_s6 = sld [smem:[#allocation6 + $0x101]]  ;;  %v276_v27 = vld [vmem:[%s945_s30] sm:$0x1]  ;;  %v280_v28 = vld [vmem:[%s945_s30 + $0x1] sm:$0x1] }
  0x5c   : > { %v232_v4 = vstv %s959_s23  ;;  %v236_v7 = vstv %s961_s21  ;;  %s995_s7 = sld [smem:[#allocation6 + $0x102]]  ;;  %s997_s26 = sld [smem:[#allocation6 + $0x103]]  ;;  %v285_v34 = vld [vmem:[%s945_s30 + $0x2] sm:$0x1]  ;;  %v290_v38 = vld [vmem:[%s945_s30 + $0x3] sm:$0x1] }
  0x5d   : > { %v233_v6 = vmul.f32 %v232_v4, %v230_v0  ;;  %v237_v10 = vmul.f32 %v236_v7, %v234_v1  ;;  %v241_v11 = vstv %s963_s27  ;;  %v246_v12 = vstv %s965_s28  ;;  %s1001_s11 = sld [smem:[#allocation7 + $0x2]]  ;;  %v552_v40 = vld [vmem:[%s945_s30 + $0x6] sm:$0x1]  ;;  %v554_v45 = vld [vmem:[%s945_s30 + $0x7] sm:$0x1]  ;;  %s1030_s12 = scalar_lea.vmem [#allocation8], %s942_s18 }
  0x5e   : > { %v242_v14 = vmul.f32 %v241_v11, %v239_v2  ;;  %v247_v15 = vmul.f32 %v246_v12, %v244_v3  ;;  %v250_v16 = vstv %s968_s20  ;;  %v259_v22 = vstv %s974_s10  ;;  %v557_v46 = vld [vmem:[%s945_s30 + $0x4] sm:$0x1]  ;;  %v559_v47 = vld [vmem:[%s945_s30 + $0x5] sm:$0x1]  ;;  %p1082_p10 = scmp.ne.s32.totalorder %s1076_s22, 0 }
  0x5f   : > { %v255_v17 = vstv %s970_s8  ;;  %v238_v20 = vadd.f32 %v237_v10, %v233_v6  ;;  %v303_v23 = vmul.f32 %v549_v18, %v232_v4  ;;  %v260_v24 = vmul.f32 %v259_v22, %v257_v8  ;;  %v561_v52 = vld [vmem:[%s945_s30 + $0x6] sm:$0x1]  ;;  %v563_v53 = vld [vmem:[%s945_s30 + $0x7] sm:$0x1]  ;;  %v567_v58 = vld [vmem:[%s945_s30 + $0x4] sm:$0x1] }
  0x60   : > { %v256_v21 = vmul.f32 %v255_v17, %v253_v5  ;;  %v264_v25 = vstv %s977_s4  ;;  %v269_v26 = vstv %s979_s19  ;;  %v307_v29 = vmul.f32 %v550_v19, %v236_v7  ;;  %v569_v59 = vld [vmem:[%s945_s30 + $0x5] sm:$0x1]  ;;  %v571_v0 = vld [vmem:[%s945_s30 + $0x6] sm:$0x1]  ;;  %s578_s18 = sshll.u32 (%p1082_p10), %s768_s15, 2 }
  0x61   : > { %v243_v30 = vadd.f32 %v242_v14, %v238_v20  ;;  %v265_v31 = vmul.f32 %v264_v25, %v262_v9  ;;  %v270_v32 = vmul.f32 %v269_v26, %v267_v13  ;;  %v273_v33 = vstv %s983_s25  ;;  %v573_v5 = vld [vmem:[%s945_s30 + $0x7] sm:$0x1]  ;;  %s381_s23 = scalar_lea.vmem (%p1082_p10), %s1070_s3, %s578_s18 }
  0x62   : > { %v261_v35 = vadd.f32 %v260_v24, %v256_v21  ;;  %v278_v36 = vstv %s985_s5  ;;  %v282_v37 = vstv %s990_s6  ;;  %v308_v39 = vadd.f32 %v307_v29, %v303_v23 }
  0x63   : > { %v248_v41 = vadd.f32 %v247_v15, %v243_v30  ;;  %v279_v42 = vmul.f32 %v278_v36, %v276_v27  ;;  %v283_v43 = vmul.f32 %v282_v37, %v280_v28  ;;  %v287_v44 = vstv %s995_s7 }
  0x64   : > { %v266_v48 = vadd.f32 %v265_v31, %v261_v35  ;;  %v288_v49 = vmul.f32 %v287_v44, %v285_v34  ;;  %v292_v50 = vstv %s997_s26  ;;  %v296_v51 = vstv %s1001_s11 }
  0x65   : > { %v251_v54 = vadd.f32 %v250_v16, %v248_v41  ;;  %v284_v55 = vadd.f32 %v283_v43, %v279_v42  ;;  %v293_v56 = vmul.f32 %v292_v50, %v290_v38  ;;  %v312_v57 = vmul.f32 %v552_v40, %v241_v11 }
  0x66   : > { %v271_v60 = vadd.f32 %v270_v32, %v266_v48  ;;  %v317_v61 = vmul.f32 %v554_v45, %v246_v12  ;;  %v327_v62 = vmul.f32 %v557_v46, %v255_v17  ;;  %v331_v63 = vmul.f32 %v559_v47, %v259_v22 }
  0x67   : > { %252 = vst [vmem:[%s1030_s12] sm:$0x1] %v251_v54  ;;  %v289_v1 = vadd.f32 %v288_v49, %v284_v55  ;;  %v313_v2 = vadd.f32 %v312_v57, %v308_v39  ;;  %v336_v3 = vmul.f32 %v561_v52, %v264_v25  ;;  %v341_v4 = vmul.f32 %v563_v53, %v269_v26 }
  0x68   : > { %v274_v6 = vadd.f32 %v273_v33, %v271_v60  ;;  %v332_v7 = vadd.f32 %v331_v63, %v327_v62  ;;  %v350_v8 = vmul.f32 %v567_v58, %v278_v36  ;;  %v354_v9 = vmul.f32 %v569_v59, %v282_v37 }
  0x69   : > { %v294_v10 = vadd.f32 %v293_v56, %v289_v1  ;;  %v318_v11 = vadd.f32 %v317_v61, %v313_v2  ;;  %v359_v12 = vmul.f32 %v571_v0, %v287_v44  ;;  %v364_v15 = vmul.f32 %v573_v5, %v292_v50 }
  0x6a   : > { %275 = vst [vmem:[%s1030_s12 + $0x1] sm:$0x1] %v274_v6  ;;  %v337_v13 = vadd.f32 %v336_v3, %v332_v7  ;;  %v355_v14 = vadd.f32 %v354_v9, %v350_v8 }
  0x6b   : > { %v297_v17 = vadd.f32 %v296_v51, %v294_v10  ;;  %v321_v18 = vadd.f32 %v318_v11, %v250_v16 }
  0x6c   : > { %v342_v19 = vadd.f32 %v341_v4, %v337_v13  ;;  %v360_v20 = vadd.f32 %v359_v12, %v355_v14  ;;  %376 = sbr.rel (!%p1082_p10) target bundleno = 123 (0x7b), region = 48 }
  0x6d   : > { %298 = vst [vmem:[%s1030_s12 + $0x2] sm:$0x1] %v297_v17  ;;  %556 = vst [vmem:[%s1030_s12 + $0x4] sm:$0x1] %v321_v18 }
  0x6e   : > { %v345_v21 = vadd.f32 %v342_v19, %v273_v33  ;;  %v365_v22 = vadd.f32 %v364_v15, %v360_v20 }
  0x70   : > { %566 = vst [vmem:[%s1030_s12 + $0x5] sm:$0x1] %v345_v21  ;;  %v368_v23 = vadd.f32 %v365_v22, %v296_v51 }
  0x72   : > { %576 = vst [vmem:[%s1030_s12 + $0x6] sm:$0x1] %v368_v23 }
  0x74   : > { %v397_v24 = vld [vmem:[%s1030_s12] sm:$0xf] }
  0x75   : > { %398 = vst [vmem:[%s381_s23] sm:$0xf] %v397_v24 }
  0x79   : > { %v399_v25 = vld [vmem:[%s1030_s12 + $0x4] sm:$0xf] }
  0x7a   : > { %400 = vst [vmem:[%s381_s23 + $0x8] sm:$0xf] %v399_v25 }
  0x7b PF: > { %s18_s17 = sadd.s32 1, %s776_s17   ;;  %s1083_s12 = smov %s760_s13 }
  0x7c   : > { %p15_p13 = scmp.ge.s32.totalorder %s18_s17, 4   ;;  %s1084_s13 = smov %s764_s14 }
  0x7d   : > { %s1085_s14 = smov %s909_s9  ;;  %s1086_s15 = smov %s772_s16 }
  0x7e   : > { %s1087_s16 = smov %s1089_s29  ;;  %17 = sbr.rel (!%p15_p13) target bundleno = 6 (0x6), region = 125 }
  0x85   :  { %437 = vsyncpa [#allocation3], 1 }
  0x86   :  { %439 = vsyncpa [#allocation3 + $0x1], 1 }
  0x87   :  { %440 = vsyncpa [#allocation4], 1 }
  0x88   :  { %442 = vsyncpa [#allocation4 + $0x1], 1 }
  0x89   :  { %443 = vsyncpa [#allocation5], 1 }
  0x8a   :  { %445 = vsyncpa [#allocation5 + $0x1], 1 }

</bundles_post_ra>
